<compile_context>
chip_gen: v7x
topology: tpu7x:2x2x1
jax: 0.10.0
libtpu: 0.0.40
codegen_flags: <defaults>
</compile_context>

<pallas_src>
import functools

import jax
import jax.numpy as jnp
import numpy as np
from jax import lax
from jax.experimental import pallas as pl
from jax.experimental.pallas import tpu as pltpu


def _pick_mine_tile(num_priors):
    # Largest chunk (sublane extent of the pairwise indicator tile) that
    # divides the padded prior count and keeps the per-chunk (tile, P) f32
    # indicator comfortably inside VMEM next to the double-buffered inputs.
    for t in (512, 256, 128):
        if num_priors % t == 0 and t * num_priors * 4 <= (4 << 20):
            return t
    return 128


def _multibox_loss_kernel(conf_ref, lab_ref, pred_ref, gt_ref, out_ref, *,
                          ratio, mine_tile):
    conf = conf_ref[0].astype(jnp.float32)     # (C, P)  classes x priors
    labels = lab_ref[0]                        # (1, P)  int32 (-1 == padding)
    pred = pred_ref[0].astype(jnp.float32)     # (4, P)
    gt = gt_ref[0].astype(jnp.float32)         # (4, P)

    num_classes, num_priors = conf.shape

    # --- log-softmax over the class (sublane) axis: only C sublanes, cheap ---
    m = jnp.max(conf, axis=0, keepdims=True)                    # (1, P)
    z = conf - m
    lse = jnp.log(jnp.sum(jnp.exp(z), axis=0, keepdims=True))   # (1, P)
    log_probs = z - lse                                         # (C, P)

    pos = labels > 0                                            # (1, P) bool
    n_positive = jnp.sum(pos.astype(jnp.float32))               # scalar
    n_negative = n_positive * ratio                             # scalar

    # --- hard negative mining (per image, sort-free, tiled) ---
    bg_loss = -log_probs[0:1, :]                                # (1, P)
    # positives AND padded priors (label != 0) can never be mined negatives
    mined_row = jnp.where(labels != 0, -jnp.inf, bg_loss)       # (1, P)

    # Column copy of `mined` (priors on sublanes): broadcast to 128 sublanes
    # and use the native 128x128-tile transpose once (P/128 vxposes), instead
    # of a full (P, P) transpose.
    mined_col = jnp.broadcast_to(mined_row, (128, num_priors)).T[:, 0:1]  # (P,1)

    tile = mine_tile
    n_chunks = num_priors // tile

    mined_row_b = jnp.broadcast_to(mined_row, (tile, num_priors))  # hoisted
    ones_lhs = jnp.ones((8, tile), dtype=jnp.float32)              # hoisted

    # rank[j] = #{ i : mined[i] > mined[j] }, accumulated chunk-by-chunk.
    # The sublane reduction of each (tile, P) indicator goes to the MXU.
    rank8 = jnp.zeros((8, num_priors), dtype=jnp.float32)
    for c in range(n_chunks):
        col_chunk = mined_col[c * tile:(c + 1) * tile, :]          # (tile, 1)
        ind = (jnp.broadcast_to(col_chunk, (tile, num_priors)) >
               mined_row_b).astype(jnp.float32)                    # (tile, P)
        rank8 = rank8 + jnp.dot(ones_lhs, ind,
                                preferred_element_type=jnp.float32)  # (8, P)
    rank = rank8[0:1, :]                                           # (1, P)
    # NOTE: equal background losses share a rank (strictly-greater count); the
    # reference breaks ties via argsort order.  Identical for non-degenerate
    # float logits.
    neg = rank < n_negative
    mask = jnp.logical_or(pos, neg)                                # (1, P)

    # --- classification loss: cross-entropy summed over mined priors ---
    # Padded labels (-1) match no class row and contribute exactly zero.
    class_iota = lax.broadcasted_iota(jnp.int32, (num_classes, num_priors), 0)
    ce = jnp.sum(jnp.where(class_iota == labels, -log_probs, 0.0),
                 axis=0, keepdims=True)                            # (1, P)
    cls_part = jnp.sum(jnp.where(mask, ce, 0.0))

    # --- regression loss: smooth L1 (beta = 1) over positive priors ---
    d = jnp.abs(pred - gt)
    sl1 = jnp.where(d < 1.0, 0.5 * d * d, d - 0.5)                 # (4, P)
    reg_rows = jnp.sum(sl1, axis=0, keepdims=True)                 # (1, P)
    reg_part = jnp.sum(jnp.where(pos, reg_rows, 0.0))

    # --- per-image packed partials: lanes 0..2 hold [reg, cls, n_pos] ---
    lane = lax.broadcasted_iota(jnp.int32, (8, 128), 1)
    packed = jnp.where(lane == 0, reg_part,
             jnp.where(lane == 1, cls_part,
             jnp.where(lane == 2, n_positive, 0.0)))
    out_ref[0] = packed


def multibox_loss(confidence, predicted_locations, labels, gt_locations,
                  negative_positive_ratio=3.0):
    """Returns (regression_loss / n_pos, classification_loss / n_pos)."""
    B, P, C = confidence.shape

    # Pad the prior axis up to a multiple of 128 (lane width).  Padded priors
    # get label = -1 so they are neither positive, mined, nor counted.
    P_pad = ((P + 127) // 128) * 128
    pad = P_pad - P
    labels = labels.astype(jnp.int32)
    if pad:
        confidence = jnp.pad(confidence, ((0, 0), (0, pad), (0, 0)))
        predicted_locations = jnp.pad(predicted_locations,
                                      ((0, 0), (0, pad), (0, 0)))
        gt_locations = jnp.pad(gt_locations, ((0, 0), (0, pad), (0, 0)))
        labels = jnp.pad(labels, ((0, 0), (0, pad)), constant_values=-1)

    # Re-layout so priors sit on the lane axis (lane-dense vregs in-kernel).
    conf_t = jnp.transpose(confidence, (0, 2, 1))              # (B, C, P)
    pred_t = jnp.transpose(predicted_locations, (0, 2, 1))     # (B, 4, P)
    gt_t = jnp.transpose(gt_locations, (0, 2, 1))              # (B, 4, P)
    lab_t = labels.reshape(B, 1, P_pad)                        # (B, 1, P)

    mine_tile = _pick_mine_tile(P_pad)
    kernel = functools.partial(_multibox_loss_kernel,
                               ratio=float(negative_positive_ratio),
                               mine_tile=mine_tile)

    grid_spec = pltpu.PrefetchScalarGridSpec(
        num_scalar_prefetch=0,
        grid=(B,),
        in_specs=[
            pl.BlockSpec((1, C, P_pad), lambda b: (b, 0, 0)),  # confidence
            pl.BlockSpec((1, 1, P_pad), lambda b: (b, 0, 0)),  # labels
            pl.BlockSpec((1, 4, P_pad), lambda b: (b, 0, 0)),  # predicted locs
            pl.BlockSpec((1, 4, P_pad), lambda b: (b, 0, 0)),  # gt locs
        ],
        out_specs=pl.BlockSpec((1, 8, 128), lambda b: (b, 0, 0)),
    )

    partials = pl.pallas_call(
        kernel,
        out_shape=jax.ShapeDtypeStruct((B, 8, 128), jnp.float32),
        grid_spec=grid_spec,
        compiler_params=pltpu.CompilerParams(
            dimension_semantics=("parallel",)),
    )(conf_t, lab_t, pred_t, gt_t)

    reg_sum = jnp.sum(partials[:, 0, 0])
    cls_sum = jnp.sum(partials[:, 0, 1])
    n = jnp.sum(partials[:, 0, 2])
    # Matches the reference semantics (division by zero if no positives).
    return reg_sum / n, cls_sum / n


def multibox_loss_ref(confidence, predicted_locations, labels, gt_locations,
                      ratio):
    """Pure-JAX reference mirroring the PyTorch module (double-argsort mining)."""
    log_probs = jax.nn.log_softmax(confidence, axis=2)
    loss = -log_probs[:, :, 0]
    pos = labels > 0
    n_positive = jnp.sum(pos.astype(jnp.float32), axis=1, keepdims=True)
    n_negative = n_positive * ratio
    loss = jnp.where(pos, -jnp.inf, loss)
    indexes = jnp.argsort(-loss, axis=1)
    orders = jnp.argsort(indexes, axis=1)
    neg = orders < n_negative
    mask = pos | neg
    ce = -jnp.take_along_axis(log_probs, labels[..., None], axis=2)[..., 0]
    cls_loss = jnp.sum(jnp.where(mask, ce, 0.0))
    d = jnp.abs(predicted_locations - gt_locations)
    sl1 = jnp.where(d < 1.0, 0.5 * d * d, d - 0.5)
    reg_loss = jnp.sum(jnp.where(pos[..., None], sl1, 0.0))
    n = jnp.sum(pos.astype(jnp.float32))
    return reg_loss / n, cls_loss / n


def _make_inputs(key, B, P, C):
    k1, k2, k3, k4, k5 = jax.random.split(key, 5)
    confidence = jax.random.normal(k1, (B, P, C), dtype=jnp.float32)
    predicted_locations = jax.random.normal(k2, (B, P, 4), dtype=jnp.float32)
    gt_locations = jax.random.normal(k3, (B, P, 4), dtype=jnp.float32)
    # ~25% of the priors are positive (label > 0), rest are background (0)
    labels = jnp.where(jax.random.uniform(k4, (B, P)) < 0.25,
                       jax.random.randint(k5, (B, P), 1, C),
                       0).astype(jnp.int32)
    return confidence, predicted_locations, labels, gt_locations


if __name__ == "__main__":
    key = jax.random.PRNGKey(0)
    k_a, k_b = jax.random.split(key)

    # Case 1: prior count already lane-aligned (B=2, P=128, C=8).
    conf, pred, lab, gt = _make_inputs(k_a, 2, 128, 8)
    reg, cls = multibox_loss(conf, pred, lab, gt, negative_positive_ratio=3.0)
    jax.block_until_ready((reg, cls))
    reg_r, cls_r = multibox_loss_ref(conf, pred, lab, gt, 3.0)
    assert np.allclose(np.array(reg), np.array(reg_r), rtol=1e-4, atol=1e-4)
    assert np.allclose(np.array(cls), np.array(cls_r), rtol=1e-4, atol=1e-4)

    # Case 2: non-multiple-of-128 prior count exercises the padding path.
    conf, pred, lab, gt = _make_inputs(k_b, 2, 96, 8)
    reg, cls = multibox_loss(conf, pred, lab, gt, negative_positive_ratio=3.0)
    jax.block_until_ready((reg, cls))
    reg_r, cls_r = multibox_loss_ref(conf, pred, lab, gt, 3.0)
    assert np.allclose(np.array(reg), np.array(reg_r), rtol=1e-4, atol=1e-4)
    assert np.allclose(np.array(cls), np.array(cls_r), rtol=1e-4, atol=1e-4)

    print("KERNEL_OK")
</pallas_src>

<mosaic_0001>
module attributes {stable_mosaic.version = 11 : i64} {
  func.func @_multibox_loss_kernel(%arg0: i32, %arg1: memref<1x8x128xf32, #tpu.memory_space<vmem>>, %arg2: memref<1x1x128xi32, #tpu.memory_space<vmem>>, %arg3: memref<1x4x128xf32, #tpu.memory_space<vmem>>, %arg4: memref<1x4x128xf32, #tpu.memory_space<vmem>>, %arg5: memref<1x8x128xf32, #tpu.memory_space<vmem>>) attributes {dimension_semantics = [#tpu.dimension_semantics<parallel>], iteration_bounds = array<i64: 2>, scalar_prefetch = 0 : i64, scratch_operands = 0 : i64, tpu.core_type = #tpu.core_type<tc>, window_params = [{transform_indices = @transform_0, window_bounds = array<i64: 1, 8, 128>}, {transform_indices = @transform_1, window_bounds = array<i64: 1, 1, 128>}, {transform_indices = @transform_2, window_bounds = array<i64: 1, 4, 128>}, {transform_indices = @transform_3, window_bounds = array<i64: 1, 4, 128>}, {transform_indices = @transform_4, window_bounds = array<i64: 1, 8, 128>}]} {
    %c0 = arith.constant 0 : index
    %c0_0 = arith.constant 0 : index
    %c0_1 = arith.constant 0 : index
    %0 = vector.load %arg1[%c0, %c0_0, %c0_1] : memref<1x8x128xf32, #tpu.memory_space<vmem>>, vector<1x8x128xf32>
    %1 = vector.shape_cast %0 : vector<1x8x128xf32> to vector<8x128xf32>
    %c0_2 = arith.constant 0 : index
    %c0_3 = arith.constant 0 : index
    %c0_4 = arith.constant 0 : index
    %2 = vector.load %arg2[%c0_2, %c0_3, %c0_4] : memref<1x1x128xi32, #tpu.memory_space<vmem>>, vector<1x1x128xi32>
    %3 = vector.shape_cast %2 : vector<1x1x128xi32> to vector<1x128xi32>
    %c0_5 = arith.constant 0 : index
    %c0_6 = arith.constant 0 : index
    %c0_7 = arith.constant 0 : index
    %4 = vector.load %arg3[%c0_5, %c0_6, %c0_7] : memref<1x4x128xf32, #tpu.memory_space<vmem>>, vector<1x4x128xf32>
    %5 = vector.shape_cast %4 : vector<1x4x128xf32> to vector<4x128xf32>
    %c0_8 = arith.constant 0 : index
    %c0_9 = arith.constant 0 : index
    %c0_10 = arith.constant 0 : index
    %6 = vector.load %arg4[%c0_8, %c0_9, %c0_10] : memref<1x4x128xf32, #tpu.memory_space<vmem>>, vector<1x4x128xf32>
    %7 = vector.shape_cast %6 : vector<1x4x128xf32> to vector<4x128xf32>
    %cst = arith.constant dense<0xFF800000> : vector<128xf32>
    %8 = vector.multi_reduction <maximumf>, %1, %cst [0] : vector<8x128xf32> to vector<128xf32>
    %9 = vector.shape_cast %8 : vector<128xf32> to vector<1x128xf32>
    %10 = vector.broadcast %9 : vector<1x128xf32> to vector<8x128xf32>
    %11 = arith.subf %1, %10 : vector<8x128xf32>
    %12 = math.exp %11 : vector<8x128xf32>
    %cst_11 = arith.constant dense<0.000000e+00> : vector<128xf32>
    %13 = vector.multi_reduction <add>, %12, %cst_11 [0] : vector<8x128xf32> to vector<128xf32>
    %14 = vector.shape_cast %13 : vector<128xf32> to vector<1x128xf32>
    %15 = math.log %14 : vector<1x128xf32>
    %16 = vector.broadcast %15 : vector<1x128xf32> to vector<8x128xf32>
    %17 = arith.subf %11, %16 : vector<8x128xf32>
    %c0_i32 = arith.constant 0 : i32
    %18 = vector.broadcast %c0_i32 : i32 to vector<1x128xi32>
    %19 = arith.cmpi sgt, %3, %18 : vector<1x128xi32>
    %20 = arith.extui %19 : vector<1x128xi1> to vector<1x128xi32>
    %21 = arith.sitofp %20 : vector<1x128xi32> to vector<1x128xf32>
    %22 = vector.shape_cast %21 : vector<1x128xf32> to vector<1x1x128xf32>
    %cst_12 = arith.constant dense<0.000000e+00> : vector<1xf32>
    %23 = vector.multi_reduction <add>, %22, %cst_12 [1, 2] : vector<1x1x128xf32> to vector<1xf32>
    %24 = vector.shape_cast %23 : vector<1xf32> to vector<1x1x1xf32>
    %25 = vector.extract %24[0, 0, 0] : f32 from vector<1x1x1xf32>
    %cst_13 = arith.constant 3.000000e+00 : f32
    %26 = arith.mulf %25, %cst_13 : f32
    %27 = vector.extract_strided_slice %17 {offsets = [0, 0], sizes = [1, 128], strides = [1, 1]} : vector<8x128xf32> to vector<1x128xf32>
    %cst_14 = arith.constant 0.000000e+00 : f32
    %28 = vector.broadcast %cst_14 : f32 to vector<1x128xf32>
    %29 = arith.subf %28, %27 : vector<1x128xf32>
    %c0_i32_15 = arith.constant 0 : i32
    %30 = vector.broadcast %c0_i32_15 : i32 to vector<1x128xi32>
    %31 = arith.cmpi ne, %3, %30 : vector<1x128xi32>
    %cst_16 = arith.constant 0xFF800000 : f32
    %32 = vector.broadcast %cst_16 : f32 to vector<1x128xf32>
    %33 = arith.select %31, %32, %29 : vector<1x128xi1>, vector<1x128xf32>
    %34 = vector.shape_cast %33 : vector<1x128xf32> to vector<1x128xf32>
    %35 = vector.broadcast %34 : vector<1x128xf32> to vector<128x128xf32>
    %36 = tpu.transpose %35, [1, 0] : vector<128x128xf32> -> vector<128x128xf32>
    %37 = vector.extract_strided_slice %36 {offsets = [0, 0], sizes = [128, 1], strides = [1, 1]} : vector<128x128xf32> to vector<128x1xf32>
    %38 = vector.shape_cast %33 : vector<1x128xf32> to vector<1x128xf32>
    %39 = vector.broadcast %38 : vector<1x128xf32> to vector<128x128xf32>
    %cst_17 = arith.constant 1.000000e+00 : f32
    %40 = vector.broadcast %cst_17 : f32 to vector<8x128xf32>
    %cst_18 = arith.constant 0.000000e+00 : f32
    %41 = vector.broadcast %cst_18 : f32 to vector<8x128xf32>
    %42 = vector.shape_cast %37 : vector<128x1xf32> to vector<128x1xf32>
    %43 = vector.broadcast %42 : vector<128x1xf32> to vector<128x128xf32>
    %44 = arith.cmpf ogt, %43, %39 : vector<128x128xf32>
    %45 = arith.extui %44 : vector<128x128xi1> to vector<128x128xi32>
    %46 = arith.sitofp %45 : vector<128x128xi32> to vector<128x128xf32>
    %cst_19 = arith.constant dense<0.000000e+00> : vector<8x128xf32>
    %47 = tpu.matmul %40, %46, %cst_19 {dimension_numbers = #tpu.dot_dimension_numbers<[1], [0], [0], [1], [0, 0, 1, 1], [], []>} : vector<8x128xf32>, vector<128x128xf32>, vector<8x128xf32> -> vector<8x128xf32>
    %48 = arith.addf %41, %47 : vector<8x128xf32>
    %49 = vector.extract_strided_slice %48 {offsets = [0, 0], sizes = [1, 128], strides = [1, 1]} : vector<8x128xf32> to vector<1x128xf32>
    %50 = vector.broadcast %26 : f32 to vector<1x128xf32>
    %51 = arith.cmpf olt, %49, %50 : vector<1x128xf32>
    %52 = arith.ori %19, %51 : vector<1x128xi1>
    %53 = tpu.iota {dimensions = array<i32: 0>} : vector<8x128xi32>
    %54 = vector.broadcast %3 : vector<1x128xi32> to vector<8x128xi32>
    %55 = arith.cmpi eq, %53, %54 : vector<8x128xi32>
    %cst_20 = arith.constant 0.000000e+00 : f32
    %56 = vector.broadcast %cst_20 : f32 to vector<8x128xf32>
    %57 = arith.subf %56, %17 : vector<8x128xf32>
    %cst_21 = arith.constant 0.000000e+00 : f32
    %58 = vector.broadcast %cst_21 : f32 to vector<8x128xf32>
    %59 = arith.select %55, %57, %58 : vector<8x128xi1>, vector<8x128xf32>
    %cst_22 = arith.constant dense<0.000000e+00> : vector<128xf32>
    %60 = vector.multi_reduction <add>, %59, %cst_22 [0] : vector<8x128xf32> to vector<128xf32>
    %61 = vector.shape_cast %60 : vector<128xf32> to vector<1x128xf32>
    %cst_23 = arith.constant 0.000000e+00 : f32
    %62 = vector.broadcast %cst_23 : f32 to vector<1x128xf32>
    %63 = arith.select %52, %61, %62 : vector<1x128xi1>, vector<1x128xf32>
    %64 = vector.shape_cast %63 : vector<1x128xf32> to vector<1x1x128xf32>
    %cst_24 = arith.constant dense<0.000000e+00> : vector<1xf32>
    %65 = vector.multi_reduction <add>, %64, %cst_24 [1, 2] : vector<1x1x128xf32> to vector<1xf32>
    %66 = vector.shape_cast %65 : vector<1xf32> to vector<1x1x1xf32>
    %67 = vector.extract %66[0, 0, 0] : f32 from vector<1x1x1xf32>
    %68 = arith.subf %5, %7 : vector<4x128xf32>
    %69 = math.absf %68 : vector<4x128xf32>
    %cst_25 = arith.constant 1.000000e+00 : f32
    %70 = vector.broadcast %cst_25 : f32 to vector<4x128xf32>
    %71 = arith.cmpf olt, %69, %70 : vector<4x128xf32>
    %cst_26 = arith.constant 5.000000e-01 : f32
    %72 = vector.broadcast %cst_26 : f32 to vector<4x128xf32>
    %73 = arith.mulf %72, %69 : vector<4x128xf32>
    %74 = arith.mulf %73, %69 : vector<4x128xf32>
    %cst_27 = arith.constant 5.000000e-01 : f32
    %75 = vector.broadcast %cst_27 : f32 to vector<4x128xf32>
    %76 = arith.subf %69, %75 : vector<4x128xf32>
    %77 = arith.select %71, %74, %76 : vector<4x128xi1>, vector<4x128xf32>
    %cst_28 = arith.constant dense<0.000000e+00> : vector<128xf32>
    %78 = vector.multi_reduction <add>, %77, %cst_28 [0] : vector<4x128xf32> to vector<128xf32>
    %79 = vector.shape_cast %78 : vector<128xf32> to vector<1x128xf32>
    %cst_29 = arith.constant 0.000000e+00 : f32
    %80 = vector.broadcast %cst_29 : f32 to vector<1x128xf32>
    %81 = arith.select %19, %79, %80 : vector<1x128xi1>, vector<1x128xf32>
    %82 = vector.shape_cast %81 : vector<1x128xf32> to vector<1x1x128xf32>
    %cst_30 = arith.constant dense<0.000000e+00> : vector<1xf32>
    %83 = vector.multi_reduction <add>, %82, %cst_30 [1, 2] : vector<1x1x128xf32> to vector<1xf32>
    %84 = vector.shape_cast %83 : vector<1xf32> to vector<1x1x1xf32>
    %85 = vector.extract %84[0, 0, 0] : f32 from vector<1x1x1xf32>
    %86 = tpu.iota {dimensions = array<i32: 1>} : vector<8x128xi32>
    %c0_i32_31 = arith.constant 0 : i32
    %87 = vector.broadcast %c0_i32_31 : i32 to vector<8x128xi32>
    %88 = arith.cmpi eq, %86, %87 : vector<8x128xi32>
    %c1_i32 = arith.constant 1 : i32
    %89 = vector.broadcast %c1_i32 : i32 to vector<8x128xi32>
    %90 = arith.cmpi eq, %86, %89 : vector<8x128xi32>
    %c2_i32 = arith.constant 2 : i32
    %91 = vector.broadcast %c2_i32 : i32 to vector<8x128xi32>
    %92 = arith.cmpi eq, %86, %91 : vector<8x128xi32>
    %cst_32 = arith.constant 0.000000e+00 : f32
    %93 = vector.broadcast %25 : f32 to vector<8x128xf32>
    %94 = vector.broadcast %cst_32 : f32 to vector<8x128xf32>
    %95 = arith.select %92, %93, %94 : vector<8x128xi1>, vector<8x128xf32>
    %96 = vector.broadcast %67 : f32 to vector<8x128xf32>
    %97 = arith.select %90, %96, %95 : vector<8x128xi1>, vector<8x128xf32>
    %98 = vector.broadcast %85 : f32 to vector<8x128xf32>
    %99 = arith.select %88, %98, %97 : vector<8x128xi1>, vector<8x128xf32>
    %c0_33 = arith.constant 0 : index
    %c0_34 = arith.constant 0 : index
    %c0_35 = arith.constant 0 : index
    %100 = vector.load %arg5[%c0_33, %c0_34, %c0_35] : memref<1x8x128xf32, #tpu.memory_space<vmem>>, vector<1x8x128xf32>
    %101 = vector.shape_cast %100 : vector<1x8x128xf32> to vector<8x128xf32>
    %102 = vector.shape_cast %99 : vector<8x128xf32> to vector<1x8x128xf32>
    tpu.vector_store %arg5[%c0_33, %c0_34, %c0_35], %102 {strides = array<i32>} : memref<1x8x128xf32, #tpu.memory_space<vmem>>, vector<1x8x128xf32>,
    return
  }
  func.func @transform_0(%arg0: i32) -> (i32, i32, i32) {
    %c0_i32 = arith.constant 0 : i32
    %c0_i32_0 = arith.constant 0 : i32
    %c0_i32_1 = arith.constant 0 : i32
    return %arg0, %c0_i32, %c0_i32_0 : i32, i32, i32
  }
  func.func @transform_1(%arg0: i32) -> (i32, i32, i32) {
    %c0_i32 = arith.constant 0 : i32
    %c0_i32_0 = arith.constant 0 : i32
    %c0_i32_1 = arith.constant 0 : i32
    return %arg0, %c0_i32, %c0_i32_0 : i32, i32, i32
  }
  func.func @transform_2(%arg0: i32) -> (i32, i32, i32) {
    %c0_i32 = arith.constant 0 : i32
    %c0_i32_0 = arith.constant 0 : i32
    %c0_i32_1 = arith.constant 0 : i32
    return %arg0, %c0_i32, %c0_i32_0 : i32, i32, i32
  }
  func.func @transform_3(%arg0: i32) -> (i32, i32, i32) {
    %c0_i32 = arith.constant 0 : i32
    %c0_i32_0 = arith.constant 0 : i32
    %c0_i32_1 = arith.constant 0 : i32
    return %arg0, %c0_i32, %c0_i32_0 : i32, i32, i32
  }
  func.func @transform_4(%arg0: i32) -> (i32, i32, i32) {
    %c0_i32 = arith.constant 0 : i32
    %c0_i32_0 = arith.constant 0 : i32
    %c0_i32_1 = arith.constant 0 : i32
    return %arg0, %c0_i32, %c0_i32_0 : i32, i32, i32
  }
}

</mosaic_0001>

<bundles_post_ra>
// kernel: tpu_custom_call.1
= control target key start
LH: loop header
LB: loop body
LE: loop exit
PB: predicated region body
PF: predicated region fallthrough
CT: control target
= control target key end

     0   :  { %9 = vsyncpa [#allocation3], 0  ;;  %s1409_s0 = inlined_call_operand.hbm [shape: f32[2,8,128], index: 0, kind: input, shape index: {}]   ;;  %s1410_s1 = inlined_call_operand.vmem [shape: s32[2,1,128], index: 1, kind: input, shape index: {}]   ;;  %s1411_s2 = inlined_call_operand.hbm [shape: f32[2,4,128], index: 2, kind: input, shape index: {}]   ;;  %s1412_s3 = inlined_call_operand.vmem [shape: f32[2,4,128], index: 3, kind: input, shape index: {}]   ;;  %s1413_s4 = inlined_call_operand.hbm [shape: f32[2,8,128], index: 4, kind: output, shape index: {}]  }
   0x1   :  { %11 = vsyncpa [#allocation3 + $0x1], 0 }
   0x2   :  { %12 = vsyncpa [#allocation6], 0 }
   0x3   :  { %14 = vsyncpa [#allocation6 + $0x1], 0 }
   0x4   :  { %15 = vsyncpa [#allocation4], 0 }
   0x5   :  { %17 = vsyncpa [#allocation4 + $0x1], 0  ;;  %s1112_s15 = smov 0   ;;  %s1114_s16 = smov 0  }
   0x6   :  { %s1116_s17 = smov 0   ;;  %s1118_s18 = smov 0  }
   0x7 LB: > { %s1133_s19 = sadd.s32 4294967295, %s1076_s18   ;;  %s751_s20 = sadd.s32 4294967294, %s1076_s18   ;;  %s1076_s18 = sphi %s1118_s18, %s1432_s18   ;;  %s1072_s17 = sphi %s1116_s17, %s1431_s17   ;;  %s1068_s16 = sphi %s1114_s16, %s1430_s16   ;;  %s1064_s15 = sphi %s1112_s15, %s1429_s15  }
   0x8   : > { %s1137_s21 = sadd.s32 1, %s1076_s18   ;;  %s30_s22 = sadd.s32 1, %s1072_s17 }
   0x9   : > { %s27_s23 = ssub.s32 %s1076_s18, %s1137_s21  ;;  %p37_p0 = scmp.ne.s32.totalorder %s1072_s17, %s1068_s16 }
   0xa   : > { %p28_p1 = scmp.eq.s32.totalorder %s27_s23, 0  ;;  %p38_p2 = scmp.eq.s32.totalorder %s1076_s18, 0 }
   0xb   : > { %p43_p3 = scmp.ne.s32.totalorder %s1068_s16, %s1064_s15  ;;  %p44_p4 = scmp.eq.s32.totalorder %s1133_s19, 0 }
   0xc   : > { %s1149_s24 = scalar_select %p28_p1, %s1072_s17, %s30_s22  }
   0xd   : > { %p1151_p5 = por %p38_p2, %p37_p0  ;;  %p1155_p6 = por %p44_p4, %p43_p3 }
   0xe   : > { %p145_p7 = scmp.eq.s32.totalorder %s1133_s19, 1  ;;  %p151_p8 = scmp.eq.s32.totalorder %s751_s20, 1 }
   0xf   : > { %s1417_s26 = scalar_select %p1155_p6, 1, 0 }
  0x10   : > { %p900_p10 = scmp.lt.s32.totalorder %s1076_s18, 2  ;;  %p1162_p11 = por %p145_p7, %p37_p0 }
  0x11   : > { %p1166_p12 = por %p151_p8, %p43_p3  ;;  %s1171_s29 = sand.u32 1, %s1072_s17  }
  0x12   : > { %s1418_s27 = scalar_select %p1162_p11, 1, 0 }
  0x13   : > { %s1419_s28 = scalar_select %p1166_p12, 1, 0 }
  0x14   : > { %s755_s30 = sshll.u32 %s1076_s18, 7  ;;  %s754_s5 = sshll.u32 %s1171_s29, 3 }
  0x15   : > { %s1178_s8 = scalar_lea.hbm %s1409_s0, %s755_s30  ;;  %s175_s9 = scalar_lea.vmem [#allocation2], %s754_s5 }
  0x16   : > { %s182_s10 = sshll.u32 %s175_s9, 4  ;;  %p1182_p13 = pnand %p900_p10, %p1151_p5  ;;  %s1186_s10 = int_to_ptr.vmem [resolvable:$true] %s182_s10 }
  0x17   : > { %s172_s12 = scalar_lea.sflag [#allocation3], %s1171_s29  ;;  %s946_s13 = scalar_lea.hbm %s1178_s8, 128 }
  0x18   : > { %p947_p2 = scmp.ne.s32.totalorder %s1178_s8, %s946_s13  ;;  %p948_p3 = pneg %p1182_p13 }
  0x19   : > { %s951_s22 = scalar_lea.hbm %s1409_s0, 256  ;;  %p952_p5 = scmp.lt.u32.totalorder %s1178_s8, %s1409_s0 }
  0x1a   : > { %p949_p4 = pnand %p948_p3, %p947_p2  ;;  %p953_p8 = scmp.lt.u32.totalorder %s951_s22, %s946_s13 }
  0x1b   : > { %p955_p9 = scmp.lt.u32.totalorder %s946_s13, %s1178_s8 }
  0x1c   : > { %p950_p7 = pneg %p949_p4  ;;  %p954_p10 = por %p953_p8, %p952_p5 }
  0x1e   : > { %p956_p0 = por %p955_p9, %p954_p10 }
  0x20   : > { %p957_p1 = pnand %p956_p0, %p950_p7 }
  0x22   : > { %960 = shalt.err (!%p957_p1)
}
  0x23   : > { %s961_s30 = scalar_lea.vmem %s1186_s10, 128  ;;  %s1078_s5 = smov [#allocation2]  }
  0x24   : > { %p962_p2 = scmp.ne.s32.totalorder %s1186_s10, %s961_s30  ;;  %s966_s6 = sshll.u32 %s1078_s5, 4  ;;  %s967_s6 = int_to_ptr.vmem [resolvable:$false] %s966_s6 }
  0x25   : > { %s968_s7 = scalar_lea.vmem %s967_s6, 256  ;;  %p969_p11 = scmp.lt.s32.totalorder %s1186_s10, %s967_s6 }
  0x26   : > { %p964_p4 = pnand %p962_p2, %p948_p3  ;;  %p970_p5 = scmp.lt.s32.totalorder %s968_s7, %s961_s30 }
  0x28   : > { %p965_p12 = pneg %p964_p4  ;;  %p971_p8 = por %p970_p5, %p969_p11 }
  0x2a   : > { %p972_p9 = pnand %p971_p8, %p965_p12 }
  0x2c   : > { %975 = shalt.err (!%p972_p9)
}
  0x2d   : > { %892 = dma.hbm_to_vmem [thread:$0]  (!%p1182_p13), %s1178_s8, 128, %s1186_s10, %s172_s12  }
  0x2e   : > { %p1421_p0 = scmp.lt.s32.totalorder %s1076_s18, 3  ;;  %p1422_p1 = scmp.ge.s32.totalorder %s1076_s18, 1 }
  0x2f   : > { %s756_s13 = sshll.u32 %s1171_s29, 2  ;;  %s757_s14 = sshll.u32 %s1076_s18, 6 }
  0x30   : > { %p1220_p7 = pnand %p1422_p1, %p1421_p0  ;;  %s1229_s23 = scalar_lea.hbm %s1411_s2, %s757_s14 }
  0x31   : > { %s199_s25 = scalar_lea.vmem [#allocation5], %s756_s13  ;;  %s196_s8 = scalar_lea.sflag [#allocation6], %s1171_s29 }
  0x32   : > { %s1423_s9 = scalar_select %p1220_p7, 1, 0 }
  0x33   : > { %s206_s30 = sshll.u32 %s199_s25, 4  ;;  %s976_s10 = scalar_lea.hbm %s1229_s23, 64  ;;  %s207_s30 = int_to_ptr.vmem [resolvable:$true] %s206_s30 }
  0x34   : > { %p977_p11 = scmp.ne.s32.totalorder %s1229_s23, %s976_s10  ;;  %s981_s6 = scalar_lea.hbm %s1411_s2, 128 }
  0x35   : > { %p982_p2 = scmp.lt.u32.totalorder %s1229_s23, %s1411_s2  ;;  %p983_p4 = scmp.lt.u32.totalorder %s981_s6, %s976_s10 }
  0x36   : > { %p979_p12 = pnand %p977_p11, %p948_p3  ;;  %p985_p8 = scmp.lt.u32.totalorder %s976_s10, %s1229_s23 }
  0x37   : > { %p984_p5 = por %p983_p4, %p982_p2 }
  0x38   : > { %p980_p10 = pneg %p979_p12 }
  0x39   : > { %p986_p9 = por %p985_p8, %p984_p5 }
  0x3b   : > { %p987_p0 = pnand %p986_p9, %p980_p10 }
  0x3d   : > { %990 = shalt.err (!%p987_p0)
}
  0x3e   : > { %s991_s29 = scalar_lea.vmem %s207_s30, 64  ;;  %s1079_s13 = smov [#allocation5]  }
  0x3f   : > { %p992_p1 = scmp.ne.s32.totalorder %s207_s30, %s991_s29  ;;  %s996_s20 = sshll.u32 %s1079_s13, 4  ;;  %s997_s20 = int_to_ptr.vmem [resolvable:$false] %s996_s20 }
  0x40   : > { %s998_s22 = scalar_lea.vmem %s997_s20, 128  ;;  %p999_p6 = scmp.lt.s32.totalorder %s207_s30, %s997_s20 }
  0x41   : > { %p994_p11 = pnand %p992_p1, %p948_p3  ;;  %p1000_p7 = scmp.lt.s32.totalorder %s998_s22, %s991_s29 }
  0x43   : > { %p995_p12 = pneg %p994_p11  ;;  %p1001_p2 = por %p1000_p7, %p999_p6 }
  0x45   : > { %p1002_p4 = pnand %p1001_p2, %p995_p12 }
  0x47   : > { %1005 = shalt.err (!%p1002_p4)
}
  0x48   : > { %895 = dma.hbm_to_vmem [thread:$0]  (!%p1182_p13), %s1229_s23, 64, %s207_s30, %s196_s8  }
  0x49   : > { %p1424_p10 = scmp.ne.s32.totalorder %s1423_s9, 0 }
  0x4a   : > { %s1254_s25 = sand.u32 (!%p1424_p10), 1, %s1068_s16   ;;  %p1425_p6 = scmp.ne.s32.totalorder (!%p1424_p10), %s1417_s26, 0 }
  0x4b   : > { %222 = sbr.rel (%p1424_p10) target bundleno = 908 (0x38c), region = 36  ;;  %s759_s10 = sshll.u32 (!%p1424_p10), %s1254_s25, 3 }
  0x4c   : > { %s225_s12 = scalar_lea.sflag (!%p1424_p10), [#allocation3], %s1254_s25  ;;  %s228_s5 = scalar_lea.vmem (!%p1424_p10), [#allocation2], %s759_s10 }
  0x52   : > { %1051 = dma.done.wait (%p1425_p6), %s225_s12, 128  }
  0x53   : > { %1053 = vsyncadd (%p1425_p6), %s225_s12, 4294967168  ;;  %s760_s11 = sshll.u32 %s1254_s25, 2  ;;  %s234_s9 = scalar_lea.sflag [#allocation6], %s1254_s25 }
  0x54   : > { %s1266_s23 = scalar_lea.vmem [#allocation5], %s760_s11 }
  0x55   : > { %1055 = dma.done.wait (%p1425_p6), %s234_s9, 64  }
  0x56   : > { %1057 = vsyncadd (%p1425_p6), %s234_s9, 4294967232  ;;  %v1080_v0 = vmov 0   ;;  %v281_v1 = vld [vmem:[%s228_s5] sm:$0xff]  ;;  %p274_p13 = scmp.lt.s32.totalorder %s1133_s19, 1  ;;  %v322_v17 = vlaneseq  ;;  %v1081_v29 = vmov 0.0|0.0   ;;  %v1082_v44 = vmov 0.0  }
  0x57   : > { %940 = vset.pattern.permute.xlu1 %v1080_v0  ;;  %v285_v2 = vrot.slane %v281_v1, 4  ;;  %853 = vmatprep.subr.bf16.mxu0 %v1081_v29  ;;  %vm306_vm2 = vcmask 1040384   ;;  %vm1083_vm3 = vmmov 0   ;;  %v1084_v49 = vmov 1.0|1.0   ;;  %s798_s5 = sshll.u32 %s1133_s19, 7 }
  0x58   : > { %s1274_s26 = scalar_select %p274_p13, %s1133_s19, 1  ;;  %v1281_v19 = vshrl.u32 %v322_v17, 7  ;;  %850 = vmatprep.mubr.msk.f32.mxu0 %vm1083_vm3, %v1082_v44 }
  0x59   : > { %v286_v3 = vmax.f32 %v281_v1, %v285_v2  ;;  %s273_s11 = scalar_lea.vmem [#allocation7], %s759_s10  ;;  %s1365_s8 = scalar_lea.hbm %s1413_s4, %s798_s5 }
  0x5a   : > { %s276_s6 = scalar_lea.vmem %s1410_s1, %s1274_s26  ;;  %v324_v23 = vsub.s32 0, %v1281_v19  ;;  %s762_s7 = sshll.u32 %s1274_s26, 2 }
  0x5b   : > { %v287_v4 = vrot.slane %v286_v3, 2  ;;  %v1283_v20 = vld [vmem:[%s276_s6] sm:$0x1]  ;;  %s280_s13 = scalar_lea.vmem %s1412_s3, %s762_s7  ;;  %s637_s9 = sshll.u32 %s273_s11, 4  ;;  %s1367_s9 = int_to_ptr.vmem [resolvable:$true] %s637_s9 }
  0x5c   : > { %vm319_vm0 = vcmp.ne.s32.totalorder %v1283_v20, 0  ;;  %vm303_vm1 = vcmp.gt.s32.totalorder %v1283_v20, 0  ;;  %s624_s19 = scalar_lea.sflag [#allocation4], %s1254_s25  ;;  %s1006_s10 = scalar_lea.vmem %s1367_s9, 128 }
  0x5d   : > { %v288_v5 = vmax.f32 %v286_v3, %v287_v4  ;;  %v763_v45 = vsel %vm303_vm1, 1.0, %v1082_v44  ;;  %p1007_p3 = scmp.ne.s32.totalorder %s1367_s9, %s1006_s10  ;;  %p1426_p7 = scmp.ne.s32.totalorder %s1418_s27, 0 }
  0x5e   : > { %v307_v46 = vsel %vm306_vm2, %v763_v45, 0.0  ;;  %s1086_s6 = smov [#allocation7]  }
  0x5f   : > { %v289_v6 = vrot.slane %v288_v5, 1  ;;  %p1008_p5 = pnand %p1007_p3, %p1426_p7  ;;  %s1010_s7 = sshll.u32 %s1086_s6, 4  ;;  %s1011_s7 = int_to_ptr.vmem [resolvable:$false] %s1010_s7 }
  0x60   : > { %s1012_s14 = scalar_lea.vmem %s1011_s7, 256  ;;  %p1013_p9 = scmp.lt.s32.totalorder %s1367_s9, %s1011_s7 }
  0x61   : > { %v290_v7 = vmax.f32 %v288_v5, %v289_v6  ;;  %p1009_p8 = pneg %p1008_p5  ;;  %p1014_p0 = scmp.lt.s32.totalorder %s1012_s14, %s1006_s10 }
  0x63   : > { %v291_v8 = vsub.f32 %v281_v1, %v290_v7  ;;  %p1015_p1 = por %p1014_p0, %p1013_p9 }
  0x65   : > { %v292_v9 = vmul.f32 1.442695, %v291_v8  ;;  %p1016_p11 = pnand %p1015_p1, %p1009_p8 }
  0x67   : > { %942 = vpow2.f32 %v292_v9  ;;  %v284_v9 = vld [vmem:[%s280_s13] sm:$0xf] }
  0x71   : > { %v943_v10 = vpop.eup %942 }
  0x72   : > { %v294_v11 = vrot.slane %v943_v10, 4 }
  0x74   : > { %v295_v12 = vadd.f32 %v943_v10, %v294_v11 }
  0x76   : > { %v296_v13 = vrot.slane %v295_v12, 2 }
  0x78   : > { %v297_v14 = vadd.f32 %v296_v13, %v295_v12  ;;  %v565_v13 = vrot.slane %v1283_v20, %v324_v23 }
  0x7a   : > { %v298_v15 = vrot.slane %v297_v14, 1 }
  0x7c   : > { %v299_v16 = vadd.f32 %v298_v15, %v297_v14 }
  0x7e   : > { %944 = vlog2.f32 %v299_v16 }
  0x88   : > { %v945_v18 = vpop.eup %944 }
  0x89   : > { %v301_v21 = vmul.f32 0.6931472, %v945_v18 }
  0x8b   : > { %v302_v22 = vsub.f32 %v291_v8, %v301_v21  ;;  %v283_v8 = vld [vmem:[%s1266_s23] sm:$0xf] }
  0x8c   : > { %v585_v10 = vsub.f32 %v283_v8, %v284_v9 }
  0x8d   : > { %v1287_v24 = vsub.f32 0.0, %v302_v22 }
  0x8e   : > { %v586_v11 = vand.u32 2147483647, %v585_v10 }
  0x8f   : > { %v320_v25 = vsel %vm319_vm0, -inf, %v1287_v24 }
  0x90   : > { %v1292_v26 = vrot.slane %v320_v25, %v324_v23  ;;  %v588_v12 = vmul.f32 0.5, %v586_v11  ;;  %v796_v15 = vadd.f32 -0.5, %v586_v11 }
  0x92   : > { %327 = vxpose.xlu0.b32.start [1/16] %v1292_v26, 128  ;;  %v589_v14 = vmul.f32 %v588_v12, %v586_v11 }
  0x96   : > { %328 = vxpose.xlu0.b32.cont [2/16] %v1292_v26, 128 }
  0x9a   : > { %329 = vxpose.xlu0.b32.cont [3/16] %v1292_v26, 128 }
  0x9e   : > { %330 = vxpose.xlu0.b32.cont [4/16] %v1292_v26, 128 }
  0xa2   : > { %331 = vxpose.xlu0.b32.cont [5/16] %v1292_v26, 128 }
  0xa6   : > { %332 = vxpose.xlu0.b32.cont [6/16] %v1292_v26, 128 }
  0xaa   : > { %333 = vxpose.xlu0.b32.cont [7/16] %v1292_v26, 128 }
  0xae   : > { %334 = vxpose.xlu0.b32.cont [8/16] %v1292_v26, 128 }
  0xb2   : > { %335 = vxpose.xlu0.b32.cont [9/16] %v1292_v26, 128 }
  0xb6   : > { %336 = vxpose.xlu0.b32.cont [10/16] %v1292_v26, 128 }
  0xba   : > { %337 = vxpose.xlu0.b32.cont [11/16] %v1292_v26, 128 }
  0xbe   : > { %338 = vxpose.xlu0.b32.cont [12/16] %v1292_v26, 128 }
  0xc2   : > { %339 = vxpose.xlu0.b32.cont [13/16] %v1292_v26, 128 }
  0xc6   : > { %340 = vxpose.xlu0.b32.cont [14/16] %v1292_v26, 128 }
  0xca   : > { %341 = vxpose.xlu0.b32.cont [15/16] %v1292_v26, 128 }
  0xce   : > { %342 = vxpose.xlu0.b32.end [16/16] %v1292_v26, 128 }
  0xf7   : > { %941 = vset.pattern.permute.xlu0 %v1080_v0  ;;  %v1085_v0 = vmov 1.0  }
  0xfb   : > { %308 = vadd.xlane.f32.xlu0 %v307_v46 }
 0x112   : > { %v343_v27 = vpop.trf.xlu0 }
 0x113   : > { %361 = vperm.xlu1 %940, %v343_v27  }
 0x116   : > { %v344_v28 = vpop.trf.xlu0 }
 0x117   : > { %366 = vperm.xlu1 %940, %v344_v28  }
 0x11a   : > { %v345_v30 = vpop.trf.xlu0 }
 0x11b   : > { %371 = vperm.xlu1 %940, %v345_v30  }
 0x11e   : > { %v346_v31 = vpop.trf.xlu0 }
 0x11f   : > { %376 = vperm.xlu1 %940, %v346_v31  }
 0x122   : > { %v347_v32 = vpop.trf.xlu0 }
 0x123   : > { %381 = vperm.xlu1 %940, %v347_v32  }
 0x126   : > { %v348_v33 = vpop.trf.xlu0 }
 0x127   : > { %386 = vperm.xlu1 %940, %v348_v33  }
 0x12a   : > { %v349_v34 = vpop.trf.xlu0 }
 0x12b   : > { %391 = vperm.xlu1 %940, %v349_v34  }
 0x12e   : > { %v350_v35 = vpop.trf.xlu0 }
 0x12f   : > { %396 = vperm.xlu1 %940, %v350_v35  }
 0x132   : > { %v351_v36 = vpop.trf.xlu0 }
 0x133   : > { %401 = vperm.xlu1 %940, %v351_v36  }
 0x136   : > { %v352_v37 = vpop.trf.xlu0 }
 0x137   : > { %406 = vperm.xlu1 %940, %v352_v37  }
 0x13a   : > { %v353_v38 = vpop.trf.xlu0 }
 0x13b   : > { %411 = vperm.xlu1 %940, %v353_v38  }
 0x13e   : > { %v354_v39 = vpop.trf.xlu0 }
 0x13f   : > { %416 = vperm.xlu1 %940, %v354_v39  }
 0x142   : > { %v355_v40 = vpop.trf.xlu0 }
 0x143   : > { %421 = vperm.xlu1 %940, %v355_v40  }
 0x146   : > { %v356_v41 = vpop.trf.xlu0 }
 0x147   : > { %426 = vperm.xlu1 %940, %v356_v41  }
 0x14a   : > { %v357_v42 = vpop.trf.xlu0 }
 0x14b   : > { %431 = vperm.xlu1 %940, %v357_v42  }
 0x14e   : > { %v358_v43 = vpop.trf.xlu0 }
 0x14f   : > { %436 = vperm.xlu1 %940, %v358_v43  }
 0x188   : > { %v309_v1 = vpop.xlane.xlu0 %308 }
 0x189   : > { %v310_v2 = vrot.slane %v309_v1, 4 }
 0x18b   : > { %v311_v3 = vadd.f32 %v310_v2, %v309_v1 }
 0x18d   : > { %v312_v4 = vrot.slane %v311_v3, 2 }
 0x18f   : > { %v313_v5 = vadd.f32 %v312_v4, %v311_v3 }
 0x191   : > { %v314_v6 = vrot.slane %v313_v5, 1 }
 0x192   : > { %v362_v47 = vpop.permute.xlu1 %361 }
 0x193   : > { %vm439_vm4 = vcmp.gt.f32.partialorder %v362_v47, %v1292_v26  ;;  %v315_v7 = vadd.f32 %v314_v6, %v313_v5 }
 0x195   : > { %877 = vpush %v315_v7 }
 0x196   : > { %v367_v48 = vpop.permute.xlu1 %366 }
 0x197   : > { %vm440_vm5 = vcmp.gt.f32.partialorder %v367_v48, %v1292_v26 }
 0x198   : > { %vm854_vm6 = vmpackc.low %vm440_vm5, %vm439_vm4 }
 0x199   : > { %855 = vmatpush3.bf16.msk.msra.mxu0 %vm854_vm6, %v1084_v49 }
 0x19a   : > { %v372_v50 = vpop.permute.xlu1 %371  ;;  %856 = vmatprep.subr.bf16.mxu0 %v1081_v29 }
 0x19b   : > { %vm441_vm7 = vcmp.gt.f32.partialorder %v372_v50, %v1292_v26 }
 0x19e   : > { %v377_v51 = vpop.permute.xlu1 %376 }
 0x19f   : > { %vm442_vm8 = vcmp.gt.f32.partialorder %v377_v51, %v1292_v26 }
 0x1a0   : > { %vm857_vm9 = vmpackc.low %vm442_vm8, %vm441_vm7 }
 0x1a1   : > { %858 = vmatpush3.bf16.msk.msra.mxu0 %vm857_vm9, %v1084_v49 }
 0x1a2   : > { %v382_v52 = vpop.permute.xlu1 %381  ;;  %859 = vmatprep.subr.bf16.mxu0 %v1081_v29 }
 0x1a3   : > { %vm443_vm10 = vcmp.gt.f32.partialorder %v382_v52, %v1292_v26 }
 0x1a6   : > { %v387_v53 = vpop.permute.xlu1 %386 }
 0x1a7   : > { %vm444_vm11 = vcmp.gt.f32.partialorder %v387_v53, %v1292_v26  ;;  %v612_v53 = vand.u32 127, %v322_v17 }
 0x1a8   : > { %vm860_vm12 = vmpackc.low %vm444_vm11, %vm443_vm10 }
 0x1a9   : > { %861 = vmatpush3.bf16.msk.msra.mxu0 %vm860_vm12, %v1084_v49 }
 0x1aa   : > { %v392_v54 = vpop.permute.xlu1 %391  ;;  %862 = vmatprep.subr.bf16.mxu0 %v1081_v29 }
 0x1ab   : > { %vm445_vm13 = vcmp.gt.f32.partialorder %v392_v54, %v1292_v26 }
 0x1ae   : > { %v397_v55 = vpop.permute.xlu1 %396 }
 0x1af   : > { %vm446_vm14 = vcmp.gt.f32.partialorder %v397_v55, %v1292_v26 }
 0x1b0   : > { %vm863_vm15 = vmpackc.low %vm446_vm14, %vm445_vm13  ;;  %vm587_vm14 = vcmp.lt.f32.partialorder %v586_v11, 1.0 }
 0x1b1   : > { %864 = vmatpush3.bf16.msk.msra.mxu0 %vm863_vm15, %v1084_v49  ;;  %vm566_vm15 = vcmp.eq.s32.totalorder %v1281_v19, %v565_v13  ;;  %v591_v16 = vsel %vm587_vm14, %v589_v14, %v796_v15 }
 0x1b2   : > { %v402_v56 = vpop.permute.xlu1 %401  ;;  %865 = vmatprep.subr.bf16.mxu0 %v1081_v29  ;;  %v567_v18 = vsel %vm566_vm15, %v1287_v24, 0.0 }
 0x1b3   : > { %vm447_vm0 = vcmp.gt.f32.partialorder %v402_v56, %v1292_v26  ;;  %v568_v22 = vrot.slane %v567_v18, 4 }
 0x1b6   : > { %v407_v57 = vpop.permute.xlu1 %406 }
 0x1b7   : > { %vm448_vm3 = vcmp.gt.f32.partialorder %v407_v57, %v1292_v26 }
 0x1b8   : > { %vm866_vm4 = vmpackc.low %vm448_vm3, %vm447_vm0  ;;  %vm592_vm0 = vcmask 1043456  }
 0x1b9   : > { %867 = vmatpush3.bf16.msk.msra.mxu0 %vm866_vm4, %v1084_v49  ;;  %v593_v21 = vsel %vm592_vm0, %v591_v16, 0.0 }
 0x1ba   : > { %v412_v58 = vpop.permute.xlu1 %411  ;;  %868 = vmatprep.subr.bf16.mxu0 %v1081_v29  ;;  %v594_v25 = vrot.slane %v593_v21, 4 }
 0x1bb   : > { %vm449_vm5 = vcmp.gt.f32.partialorder %v412_v58, %v1292_v26 }
 0x1bc   : > { %v595_v27 = vadd.f32 %v594_v25, %v593_v21 }
 0x1be   : > { %v417_v59 = vpop.permute.xlu1 %416 }
 0x1bf   : > { %vm450_vm6 = vcmp.gt.f32.partialorder %v417_v59, %v1292_v26 }
 0x1c0   : > { %vm869_vm7 = vmpackc.low %vm450_vm6, %vm449_vm5  ;;  %vm613_vm5 = vcmp.eq.s32.totalorder %v612_v53, 0 }
 0x1c1   : > { %870 = vmatpush3.bf16.msk.msra.mxu0 %vm869_vm7, %v1084_v49 }
 0x1c2   : > { %v422_v60 = vpop.permute.xlu1 %421  ;;  %871 = vmatprep.subr.bf16.mxu0 %v1081_v29 }
 0x1c3   : > { %vm451_vm8 = vcmp.gt.f32.partialorder %v422_v60, %v1292_v26 }
 0x1c6   : > { %v427_v61 = vpop.permute.xlu1 %426  ;;  %s1348_s20 = spop %877 }
 0x1c7   : > { %vm452_vm9 = vcmp.gt.f32.partialorder %v427_v61, %v1292_v26  ;;  %s317_s22 = smul.f32 3.0, %s1348_s20  ;;  %v616_v54 = vstv %s1348_s20 }
 0x1c8   : > { %vm872_vm10 = vmpackc.low %vm452_vm9, %vm451_vm8 }
 0x1c9   : > { %873 = vmatpush3.bf16.msk.msra.mxu0 %vm872_vm10, %v1084_v49  ;;  %v557_v35 = vstv %s317_s22 }
 0x1ca   : > { %v432_v62 = vpop.permute.xlu1 %431  ;;  %874 = vmatprep.subr.bf16.mxu0 %v1081_v29  ;;  %v596_v29 = vrot.slane %v595_v27, 2 }
 0x1cb   : > { %vm453_vm11 = vcmp.gt.f32.partialorder %v432_v62, %v1292_v26 }
 0x1cc   : > { %v597_v31 = vadd.f32 %v596_v29, %v595_v27 }
 0x1ce   : > { %v437_v63 = vpop.permute.xlu1 %436  ;;  %v598_v32 = vrot.slane %v597_v31, 1 }
 0x1cf   : > { %vm454_vm12 = vcmp.gt.f32.partialorder %v437_v63, %v1292_v26  ;;  %v569_v26 = vadd.f32 %v568_v22, %v567_v18 }
 0x1d0   : > { %vm875_vm13 = vmpackc.low %vm454_vm12, %vm453_vm11  ;;  %v599_v33 = vadd.f32 %v598_v32, %v597_v31 }
 0x1d1   : > { %876 = vmatpush3.bf16.msk.msra.mxu0 %vm875_vm13, %v1084_v49  ;;  %v570_v28 = vrot.slane %v569_v26, 2 }
 0x1d2   : > { %v600_v37 = vsel %vm303_vm1, %v599_v33, 0.0 }
 0x1d3   : > { %v571_v30 = vadd.f32 %v570_v28, %v569_v26  ;;  %v601_v39 = vsel %vm306_vm2, %v600_v37, 0.0 }
 0x1d4   : > { %851 = vmatmul.mubr.f32.vlgmr.msra.gmra.mrb[0].mxu0 %v1085_v0 }
 0x1d5   : > { %v572_v23 = vrot.slane %v571_v30, 1 }
 0x1d7   : > { %v573_v19 = vadd.f32 %v572_v23, %v571_v30 }
 0x2a7   : > { %v553_v34 = vpop.f32.mrb[0].mxu0 }
 0x2a8   : > { %vm558_vm3 = vcmp.lt.f32.partialorder %v553_v34, %v557_v35  ;;  %v852_v24 = vpop.f32.mrb[1].mxu0 }
 0x2a9   : > { %vm559_vm4 = vmor %vm303_vm1, %vm558_vm3  ;;  %vm615_vm1 = vcmp.eq.s32.totalorder %v612_v53, 2 }
 0x2aa   : > { %v574_v36 = vsel %vm559_vm4, %v573_v19, 0.0  ;;  %v617_v56 = vsel %vm615_vm1, %v616_v54, 0.0 }
 0x2ab   : > { %v575_v38 = vsel %vm306_vm2, %v574_v36, 0.0  ;;  %vm614_vm2 = vcmp.eq.s32.totalorder %v612_v53, 1 }
 0x2ac   : > { %576 = vadd.xlane.f32.xlu1 %v575_v38 }
 0x2b0   : > { %602 = vadd.xlane.f32.xlu1 %v601_v39 }
 0x339   : > { %v577_v40 = vpop.xlane.xlu1 %576 }
 0x33a   : > { %v578_v41 = vrot.slane %v577_v40, 4 }
 0x33c   : > { %v579_v42 = vadd.f32 %v578_v41, %v577_v40 }
 0x33d   : > { %v603_v43 = vpop.xlane.xlu1 %602 }
 0x33e   : > { %v580_v44 = vrot.slane %v579_v42, 2  ;;  %v604_v45 = vrot.slane %v603_v43, 4 }
 0x340   : > { %v605_v46 = vadd.f32 %v604_v45, %v603_v43  ;;  %v581_v47 = vadd.f32 %v580_v44, %v579_v42 }
 0x342   : > { %v606_v48 = vrot.slane %v605_v46, 2  ;;  %v582_v20 = vrot.slane %v581_v47, 1 }
 0x344   : > { %v607_v49 = vadd.f32 %v606_v48, %v605_v46  ;;  %v583_v50 = vadd.f32 %v582_v20, %v581_v47 }
 0x346   : > { %879 = vpush %v583_v50  ;;  %v608_v51 = vrot.slane %v607_v49, 1 }
 0x348   : > { %v609_v52 = vadd.f32 %v608_v51, %v607_v49 }
 0x34a   : > { %881 = vpush %v609_v52 }
 0x377   : > { %s880_s12 = spop %879 }
 0x378   : > { %v618_v55 = vstv %s880_s12 }
 0x379   : > { %v619_v57 = vsel %vm614_vm2, %v618_v55, %v617_v56 }
 0x37b   : > { %s882_s23 = spop %881 }
 0x37c   : > { %v620_v58 = vstv %s882_s23 }
 0x37d   : > { %v621_v17 = vsel %vm613_vm5, %v620_v58, %v619_v57 }
 0x37e   : > { %622 = vst [vmem:[%s273_s11] sm:$0xff] %v621_v17 }
 0x37f   : > { %1019 = shalt.err (!%p1016_p11)
}
 0x380   : > { %s1020_s25 = scalar_lea.hbm %s1365_s8, 128  ;;  %s1024_s20 = scalar_lea.hbm %s1413_s4, 256 }
 0x381   : > { %p1021_p12 = scmp.ne.s32.totalorder %s1365_s8, %s1020_s25  ;;  %p1025_p10 = scmp.lt.u32.totalorder %s1365_s8, %s1413_s4 }
 0x382   : > { %p1026_p6 = scmp.lt.u32.totalorder %s1024_s20, %s1020_s25  ;;  %p1028_p3 = scmp.lt.u32.totalorder %s1020_s25, %s1365_s8 }
 0x383   : > { %p1022_p2 = pnand %p1021_p12, %p1426_p7 }
 0x384   : > { %p1027_p13 = por %p1026_p6, %p1025_p10 }
 0x385   : > { %p1023_p4 = pneg %p1022_p2 }
 0x386   : > { %p1029_p5 = por %p1028_p3, %p1027_p13 }
 0x388   : > { %p1030_p8 = pnand %p1029_p5, %p1023_p4 }
 0x38a   : > { %1033 = shalt.err (!%p1030_p8)
}
 0x38b   : > { %887 = dma.vmem_to_hbm [thread:$0]  (%p1426_p7), %s1367_s9, 128, %s1365_s8, %s624_s19  }
 0x38c PF: > { %s649_s5 = sand.u32 1, %s1064_s15   ;;  %p1427_p9 = scmp.ne.s32.totalorder %s1419_s28, 0 }
 0x38d   : > { %p1428_p0 = scmp.ge.s32.totalorder %s1076_s18, 2  ;;  %s650_s11 = scalar_lea.sflag [#allocation4], %s649_s5 }
 0x38f   : > { %p897_p1 = pnand %p1428_p0, %p1427_p9 }
 0x391   : > { %1059 = dma.done.wait (!%p897_p1), %s650_s11, 128  }
 0x392   : > { %1061 = vsyncadd (!%p897_p1), %s650_s11, 4294967168  ;;  %p20_p11 = scmp.ge.s32.totalorder %s1137_s21, 4   ;;  %s1429_s15 = smov %s1068_s16 }
 0x393   : > { %s1430_s16 = smov %s1072_s17  ;;  %s1431_s17 = smov %s1149_s24 }
 0x394   : > { %s1432_s18 = smov %s1137_s21  ;;  %22 = sbr.rel (!%p20_p11) target bundleno = 7 (0x7), region = 100 }
 0x39b   :  { %655 = vsyncpa [#allocation3], 1 }
 0x39c   :  { %657 = vsyncpa [#allocation3 + $0x1], 1 }
 0x39d   :  { %658 = vsyncpa [#allocation6], 1 }
 0x39e   :  { %660 = vsyncpa [#allocation6 + $0x1], 1 }
 0x39f   :  { %661 = vsyncpa [#allocation4], 1 }
 0x3a0   :  { %663 = vsyncpa [#allocation4 + $0x1], 1 }

</bundles_post_ra>
